<compile_context>
chip_gen: v6e
topology: v6e:2x2x1
jax: 0.10.0
libtpu: 0.0.40
codegen_flags: <defaults>
</compile_context>

<pallas_src>
import jax
import jax.numpy as jnp
from jax import lax
from jax.experimental import pallas as pl
from jax.experimental.pallas import tpu as pltpu

T_TEMP = 2.0           # self.T
CE_LOSS_WEIGHT = 1.0   # self.ce_loss_weight
NORM_EPS = 1e-12       # F.normalize eps


# --------------------------------------------------------------------------
# Kernel 1: sum over all (n, h, w) of ||normalize(s) - normalize(t)||^2,
#           normalize over the channel axis C.
# Grid: (batch_blocks, spatial_tiles); block = (BN, C, TL); per-batch-block
# lane-dense (1, 1, 128) output, accumulated in a VMEM scratch.
# --------------------------------------------------------------------------
def _hint_mse_kernel(s_ref, t_ref, out_ref, acc_ref):
    s_idx = pl.program_id(1)

    @pl.when(s_idx == 0)
    def _():
        acc_ref[...] = jnp.zeros_like(acc_ref)

    s = s_ref[...].astype(jnp.float32)          # (BN, C, TL)
    t = t_ref[...].astype(jnp.float32)

    # TODO(synk): if a v7x bundle dump shows the vmul/vadd slots saturating at
    # 3.2 TB/s HBM, offload these channel reductions to the MXU (ones(1, C)
    # contractions with preferred_element_type=f32).
    ss = jnp.sum(s * s, axis=1, keepdims=True)  # (BN, 1, TL)
    tt = jnp.sum(t * t, axis=1, keepdims=True)
    st = jnp.sum(s * t, axis=1, keepdims=True)

    # 1 / max(||x||, eps) == rsqrt(max(||x||^2, eps^2))  (exact, incl. x == 0)
    inv_s = lax.rsqrt(jnp.maximum(ss, NORM_EPS * NORM_EPS))
    inv_t = lax.rsqrt(jnp.maximum(tt, NORM_EPS * NORM_EPS))

    # ||s_hat - t_hat||^2 per (batch, spatial column); zero-padded spatial
    # columns contribute exactly 0.
    col = (ss * (inv_s * inv_s) + tt * (inv_t * inv_t)
           - 2.0 * st * (inv_s * inv_t))        # (BN, 1, TL)

    # Lane-chunk fold: statically unrolled 128-lane aligned slices (pure VPU
    # adds, no cross-vreg reshape/relayout).
    tl = col.shape[2]
    lane_acc = col[:, :, 0:128]
    for k in range(1, tl // 128):
        lane_acc = lane_acc + col[:, :, k * 128:(k + 1) * 128]   # (BN, 1, 128)

    acc_ref[...] = acc_ref[...] + jnp.sum(lane_acc, axis=0)      # (1, 128)

    @pl.when(s_idx == pl.num_programs(1) - 1)
    def _():
        out_ref[...] = acc_ref[...][None]                        # (1, 1, 128)


def _choose_tiles(n, c, hw_pad, itemsize, max_block_bytes):
    """Pick (TL, BN): lane tile + batch fold under the per-block byte cap."""
    # 1) Lane tile: largest multiple of 128 dividing hw_pad, under the byte
    #    cap (at BN=1) and a lane cap that bounds in-kernel unrolled slices.
    max_lanes_bytes = max(128, (max_block_bytes // (c * itemsize)) // 128 * 128)
    lane_cap = min(hw_pad, max_lanes_bytes, 8192)
    tl = max(128, lane_cap - lane_cap % 128)
    while hw_pad % tl:
        tl -= 128
    # 2) Batch fold: largest divisor of n fitting the remaining byte budget.
    #    Keep >= 2 batch-blocks when n >= 2 so the "parallel" grid axis can be
    #    split across the two TensorCores on v7x (no-op on v5e/v6e).
    bn_cap = max(1, max_block_bytes // (c * tl * itemsize))
    if n >= 2:
        bn_cap = min(bn_cap, n // 2)
    bn = 1
    for cand in range(min(bn_cap, n), 0, -1):
        if n % cand == 0:
            bn = cand
            break
    return tl, bn


def hint_mse_sum(feat_s, feat_t, *, max_block_bytes=2 << 20):
    """feat_s/feat_t: (N, C, H, W). Returns sum((norm_C(s) - norm_C(t))**2)."""
    N, C, H, W = feat_s.shape
    HW = H * W
    s3 = feat_s.reshape(N, C, HW)   # free view of the NCHW buffer
    t3 = feat_t.reshape(N, C, HW)

    # Zero-pad spatial to a multiple of 128: padded columns contribute exactly
    # 0 to the loss, and every block stays lane-dense and cap-respecting.
    HW_pad = ((HW + 127) // 128) * 128
    if HW_pad != HW:
        pad = ((0, 0), (0, 0), (0, HW_pad - HW))
        s3 = jnp.pad(s3, pad)
        t3 = jnp.pad(t3, pad)

    itemsize = jnp.dtype(feat_s.dtype).itemsize
    TL, BN = _choose_tiles(N, C, HW_pad, itemsize, max_block_bytes)
    NB = N // BN
    S = HW_pad // TL

    block_bytes = BN * C * TL * itemsize
    # Explicit VMEM budget: 2 inputs x 2 pipeline buffers x block + headroom,
    # capped at 48 MiB (< v7x's 64 MiB physical VMEM).
    vmem_limit_bytes = int(min(48 << 20, max(16 << 20, 12 * block_bytes)))

    partials = pl.pallas_call(
        _hint_mse_kernel,
        out_shape=jax.ShapeDtypeStruct((NB, 1, 128), jnp.float32),
        grid_spec=pltpu.PrefetchScalarGridSpec(
            num_scalar_prefetch=0,
            grid=(NB, S),
            in_specs=[
                pl.BlockSpec((BN, C, TL), lambda nb, s: (nb, 0, s)),
                pl.BlockSpec((BN, C, TL), lambda nb, s: (nb, 0, s)),
            ],
            out_specs=pl.BlockSpec((1, 1, 128), lambda nb, s: (nb, 0, 0)),
            scratch_shapes=[pltpu.VMEM((1, 128), jnp.float32)],
        ),
        compiler_params=pltpu.CompilerParams(
            dimension_semantics=("parallel", "arbitrary"),
            vmem_limit_bytes=vmem_limit_bytes),
    )(s3, t3)
    return jnp.sum(partials)   # tiny (NB*128,) reduce in XLA


# --------------------------------------------------------------------------
# Kernel 2: per-row softmax cross-entropy with integer targets; grid over N.
# The CE work is negligible; mean is done in XLA.
# --------------------------------------------------------------------------
def _ce_kernel(logits_ref, target_ref, out_ref):
    logits = logits_ref[...].astype(jnp.float32)      # (BN, K)
    labels = target_ref[...]                          # (BN, 1) int32

    iota = lax.broadcasted_iota(jnp.int32, logits.shape, 1)
    onehot = iota == labels                           # (BN, K) bool

    m = jnp.max(logits, axis=-1, keepdims=True)
    lse = m + jnp.log(jnp.sum(jnp.exp(logits - m), axis=-1, keepdims=True))
    picked = jnp.sum(jnp.where(onehot, logits, 0.0), axis=-1, keepdims=True)

    out_ref[...] = lse - picked                       # (BN, 1) per-row loss


def _choose_ce_rows(n, k, itemsize, max_block_bytes=4 << 20):
    if n * k * itemsize <= max_block_bytes:
        return n
    cap = max(8, max_block_bytes // (k * itemsize))
    for cand in range(min(cap, n) // 8 * 8, 0, -8):   # multiple of 8 sublanes
        if n % cand == 0:
            return cand
    return n  # TODO(synk): single (possibly large) block fallback for odd N


def cross_entropy_mean(logits, target):
    N, K = logits.shape
    target2d = target.astype(jnp.int32).reshape(N, 1)
    itemsize = jnp.dtype(logits.dtype).itemsize
    BN = _choose_ce_rows(N, K, itemsize)

    per_row = pl.pallas_call(
        _ce_kernel,
        out_shape=jax.ShapeDtypeStruct((N, 1), jnp.float32),
        grid_spec=pltpu.PrefetchScalarGridSpec(
            num_scalar_prefetch=0,
            grid=(N // BN,),
            in_specs=[
                pl.BlockSpec((BN, K), lambda i: (i, 0)),
                pl.BlockSpec((BN, 1), lambda i: (i, 0)),
            ],
            out_specs=pl.BlockSpec((BN, 1), lambda i: (i, 0)),
        ),
        compiler_params=pltpu.CompilerParams(
            dimension_semantics=("parallel",)),
    )(logits, target2d)
    return jnp.mean(per_row)


# --------------------------------------------------------------------------
# HintLoss forward
# --------------------------------------------------------------------------
def hint_loss_forward(feat_s, feat_t, logits_s, target):
    """feat_s/feat_t: (N, C, H, W); logits_s: (N, K); target: (N,) int."""
    N = feat_s.shape[0]
    mse_sum = hint_mse_sum(feat_s, feat_t)
    loss_kd = mse_sum / (T_TEMP * N)
    loss_ce = CE_LOSS_WEIGHT * cross_entropy_mean(logits_s, target)
    return {"loss_ce": loss_ce, "loss_kd": loss_kd}


def _reference(feat_s, feat_t, logits_s, target):
    N = feat_s.shape[0]

    def norm(x):
        n = jnp.sqrt(jnp.sum(x * x, axis=1, keepdims=True))
        return x / jnp.maximum(n, NORM_EPS)

    loss_kd = jnp.sum((norm(feat_s) - norm(feat_t)) ** 2) / (T_TEMP * N)
    logp = jax.nn.log_softmax(logits_s, axis=-1)
    loss_ce = -jnp.mean(jnp.take_along_axis(logp, target[:, None], axis=-1))
    return {"loss_ce": loss_ce, "loss_kd": loss_kd}


def _assert_close(name, a, b, rtol=1e-4, atol=1e-5):
    a = float(a)
    b = float(b)
    err = abs(a - b)
    tol = atol + rtol * abs(b)
    assert err <= tol, f"{name}: got {a}, expected {b} (err={err}, tol={tol})"


if __name__ == "__main__":
    key = jax.random.PRNGKey(0)
    k1, k2, k3, k4 = jax.random.split(key, 4)

    N, C, H, W = 2, 4, 16, 16   # HW = 256 (already a multiple of 128)
    K = 32                      # number of classes

    feat_s = jax.random.normal(k1, (N, C, H, W), dtype=jnp.float32)
    feat_t = jax.random.normal(k2, (N, C, H, W), dtype=jnp.float32)
    logits_s = jax.random.normal(k3, (N, K), dtype=jnp.float32)
    target = jax.random.randint(k4, (N,), 0, K, dtype=jnp.int32)

    losses = hint_loss_forward(feat_s, feat_t, logits_s, target)
    losses = jax.tree_util.tree_map(jax.block_until_ready, losses)

    ref = _reference(feat_s, feat_t, logits_s, target)
    _assert_close("loss_kd", losses["loss_kd"], ref["loss_kd"])
    _assert_close("loss_ce", losses["loss_ce"], ref["loss_ce"])

    print("KERNEL_OK")
</pallas_src>

<mosaic_0001>
module attributes {stable_mosaic.version = 11 : i64} {
  func.func @_hint_mse_kernel(%arg0: i32, %arg1: i32, %arg2: memref<1x4x256xf32, #tpu.memory_space<vmem>>, %arg3: memref<1x4x256xf32, #tpu.memory_space<vmem>>, %arg4: memref<1x1x128xf32, #tpu.memory_space<vmem>>, %arg5: memref<1x128xf32, #tpu.memory_space<vmem>>) attributes {dimension_semantics = [#tpu.dimension_semantics<parallel>, #tpu.dimension_semantics<arbitrary>], iteration_bounds = array<i64: 2, 1>, scalar_prefetch = 0 : i64, scratch_operands = 1 : i64, tpu.core_type = #tpu.core_type<tc>, window_params = [{transform_indices = @transform_0, window_bounds = array<i64: 1, 4, 256>}, {transform_indices = @transform_1, window_bounds = array<i64: 1, 4, 256>}, {transform_indices = @transform_2, window_bounds = array<i64: 1, 1, 128>}]} {
    %c0_i32 = arith.constant 0 : i32
    %0 = arith.cmpi eq, %arg1, %c0_i32 : i32
    %1 = arith.extui %0 : i1 to i32
    %c0_i32_0 = arith.constant 0 : i32
    %2 = arith.cmpi ne, %1, %c0_i32_0 : i32
    scf.if %2 {
      %cst_18 = arith.constant 0.000000e+00 : f32
      %40 = vector.broadcast %cst_18 : f32 to vector<1x128xf32>
      %c0_19 = arith.constant 0 : index
      %c0_20 = arith.constant 0 : index
      %41 = vector.load %arg5[%c0_19, %c0_20] : memref<1x128xf32, #tpu.memory_space<vmem>>, vector<1x128xf32>
      tpu.vector_store %arg5[%c0_19, %c0_20], %40 {strides = array<i32>} : memref<1x128xf32, #tpu.memory_space<vmem>>, vector<1x128xf32>,
    } else {
    }
    %c0 = arith.constant 0 : index
    %c0_1 = arith.constant 0 : index
    %c0_2 = arith.constant 0 : index
    %3 = vector.load %arg2[%c0, %c0_1, %c0_2] : memref<1x4x256xf32, #tpu.memory_space<vmem>>, vector<1x4x256xf32>
    %c0_3 = arith.constant 0 : index
    %c0_4 = arith.constant 0 : index
    %c0_5 = arith.constant 0 : index
    %4 = vector.load %arg3[%c0_3, %c0_4, %c0_5] : memref<1x4x256xf32, #tpu.memory_space<vmem>>, vector<1x4x256xf32>
    %5 = arith.mulf %3, %3 : vector<1x4x256xf32>
    %cst = arith.constant dense<0.000000e+00> : vector<1x256xf32>
    %6 = vector.multi_reduction <add>, %5, %cst [1] : vector<1x4x256xf32> to vector<1x256xf32>
    %7 = vector.shape_cast %6 : vector<1x256xf32> to vector<1x1x256xf32>
    %8 = arith.mulf %4, %4 : vector<1x4x256xf32>
    %cst_6 = arith.constant dense<0.000000e+00> : vector<1x256xf32>
    %9 = vector.multi_reduction <add>, %8, %cst_6 [1] : vector<1x4x256xf32> to vector<1x256xf32>
    %10 = vector.shape_cast %9 : vector<1x256xf32> to vector<1x1x256xf32>
    %11 = arith.mulf %3, %4 : vector<1x4x256xf32>
    %cst_7 = arith.constant dense<0.000000e+00> : vector<1x256xf32>
    %12 = vector.multi_reduction <add>, %11, %cst_7 [1] : vector<1x4x256xf32> to vector<1x256xf32>
    %13 = vector.shape_cast %12 : vector<1x256xf32> to vector<1x1x256xf32>
    %cst_8 = arith.constant 1.000000e-24 : f32
    %14 = vector.broadcast %cst_8 : f32 to vector<1x1x256xf32>
    %15 = arith.maximumf %7, %14 : vector<1x1x256xf32>
    %16 = math.rsqrt %15 : vector<1x1x256xf32>
    %cst_9 = arith.constant 1.000000e-24 : f32
    %17 = vector.broadcast %cst_9 : f32 to vector<1x1x256xf32>
    %18 = arith.maximumf %10, %17 : vector<1x1x256xf32>
    %19 = math.rsqrt %18 : vector<1x1x256xf32>
    %20 = arith.mulf %16, %16 : vector<1x1x256xf32>
    %21 = arith.mulf %7, %20 : vector<1x1x256xf32>
    %22 = arith.mulf %19, %19 : vector<1x1x256xf32>
    %23 = arith.mulf %10, %22 : vector<1x1x256xf32>
    %24 = arith.addf %21, %23 : vector<1x1x256xf32>
    %cst_10 = arith.constant 2.000000e+00 : f32
    %25 = vector.broadcast %cst_10 : f32 to vector<1x1x256xf32>
    %26 = arith.mulf %25, %13 : vector<1x1x256xf32>
    %27 = arith.mulf %16, %19 : vector<1x1x256xf32>
    %28 = arith.mulf %26, %27 : vector<1x1x256xf32>
    %29 = arith.subf %24, %28 : vector<1x1x256xf32>
    %30 = vector.extract_strided_slice %29 {offsets = [0, 0, 0], sizes = [1, 1, 128], strides = [1, 1, 1]} : vector<1x1x256xf32> to vector<1x1x128xf32>
    %31 = vector.extract_strided_slice %29 {offsets = [0, 0, 128], sizes = [1, 1, 128], strides = [1, 1, 1]} : vector<1x1x256xf32> to vector<1x1x128xf32>
    %32 = arith.addf %30, %31 : vector<1x1x128xf32>
    %c0_11 = arith.constant 0 : index
    %c0_12 = arith.constant 0 : index
    %33 = vector.load %arg5[%c0_11, %c0_12] : memref<1x128xf32, #tpu.memory_space<vmem>>, vector<1x128xf32>
    %cst_13 = arith.constant dense<0.000000e+00> : vector<1x128xf32>
    %34 = vector.multi_reduction <add>, %32, %cst_13 [0] : vector<1x1x128xf32> to vector<1x128xf32>
    %35 = arith.addf %33, %34 : vector<1x128xf32>
    %c0_14 = arith.constant 0 : index
    %c0_15 = arith.constant 0 : index
    %36 = vector.load %arg5[%c0_14, %c0_15] : memref<1x128xf32, #tpu.memory_space<vmem>>, vector<1x128xf32>
    tpu.vector_store %arg5[%c0_14, %c0_15], %35 {strides = array<i32>} : memref<1x128xf32, #tpu.memory_space<vmem>>, vector<1x128xf32>,
    %c0_i32_16 = arith.constant 0 : i32
    %37 = arith.cmpi eq, %arg1, %c0_i32_16 : i32
    %38 = arith.extui %37 : i1 to i32
    %c0_i32_17 = arith.constant 0 : i32
    %39 = arith.cmpi ne, %38, %c0_i32_17 : i32
    scf.if %39 {
      %c0_18 = arith.constant 0 : index
      %c0_19 = arith.constant 0 : index
      %40 = vector.load %arg5[%c0_18, %c0_19] : memref<1x128xf32, #tpu.memory_space<vmem>>, vector<1x128xf32>
      %41 = vector.shape_cast %40 : vector<1x128xf32> to vector<1x1x128xf32>
      %c0_20 = arith.constant 0 : index
      %c0_21 = arith.constant 0 : index
      %c0_22 = arith.constant 0 : index
      %42 = vector.load %arg4[%c0_20, %c0_21, %c0_22] : memref<1x1x128xf32, #tpu.memory_space<vmem>>, vector<1x1x128xf32>
      tpu.vector_store %arg4[%c0_20, %c0_21, %c0_22], %41 {strides = array<i32>} : memref<1x1x128xf32, #tpu.memory_space<vmem>>, vector<1x1x128xf32>,
    } else {
    }
    return
  }
  func.func @transform_0(%arg0: i32, %arg1: i32) -> (i32, i32, i32) {
    %c0_i32 = arith.constant 0 : i32
    %c0_i32_0 = arith.constant 0 : i32
    return %arg0, %c0_i32, %arg1 : i32, i32, i32
  }
  func.func @transform_1(%arg0: i32, %arg1: i32) -> (i32, i32, i32) {
    %c0_i32 = arith.constant 0 : i32
    %c0_i32_0 = arith.constant 0 : i32
    return %arg0, %c0_i32, %arg1 : i32, i32, i32
  }
  func.func @transform_2(%arg0: i32, %arg1: i32) -> (i32, i32, i32) {
    %c0_i32 = arith.constant 0 : i32
    %c0_i32_0 = arith.constant 0 : i32
    %c0_i32_1 = arith.constant 0 : i32
    return %arg0, %c0_i32, %c0_i32_0 : i32, i32, i32
  }
}

</mosaic_0001>

<bundles_post_ra>
// kernel: tpu_custom_call.1
= control target key start
LH: loop header
LB: loop body
LE: loop exit
PB: predicated region body
PF: predicated region fallthrough
CT: control target
= control target key end

     0   :  { %7 = vsyncpa [#allocation4], 0  ;;  %s862_s0 = inlined_call_operand.hbm [shape: f32[2,4,256], index: 0, kind: input, shape index: {}]   ;;  %s863_s1 = inlined_call_operand.hbm [shape: f32[2,4,256], index: 1, kind: input, shape index: {}]   ;;  %s864_s2 = inlined_call_operand.hbm [shape: f32[2,1,128], index: 2, kind: output, shape index: {}]  }
   0x1   :  { %9 = vsyncpa [#allocation4 + $0x1], 0 }
   0x2   :  { %10 = vsyncpa [#allocation7], 0 }
   0x3   :  { %12 = vsyncpa [#allocation7 + $0x1], 0 }
   0x4   :  { %13 = vsyncpa [#allocation5], 0 }
   0x5   :  { %15 = vsyncpa [#allocation5 + $0x1], 0  ;;  %s688_s9 = smov 0   ;;  %s690_s10 = smov 0  }
   0x6   :  { %s692_s11 = smov 0   ;;  %s694_s12 = smov 0  }
   0x7   :  { %s696_s13 = smov 0   ;;  %s698_s14 = smov 0  }
   0x8 LB: > { %s433_s15 = sadd.s32 4294967295, %s667_s14   ;;  %s434_s16 = sadd.s32 4294967294, %s667_s14   ;;  %s667_s14 = sphi %s698_s14, %s21_s14   ;;  %s663_s13 = sphi %s696_s13, %s876_s13   ;;  %s659_s12 = sphi %s694_s12, %s875_s12   ;;  %s655_s11 = sphi %s692_s11, %s874_s11   ;;  %s651_s10 = sphi %s690_s10, %s873_s10   ;;  %s647_s9 = sphi %s688_s9, %s872_s9  }
   0x9   : > { %s33_s17 = sadd.s32 1, %s663_s13  ;;  %s42_s18 = sadd.s32 1, %s655_s11 }
   0xa   : > { %p35_p0 = scmp.ge.s32.totalorder %s33_s17, 2  ;;  %p49_p1 = scmp.ne.s32.totalorder %s655_s11, %s651_s10 }
   0xb   : > { %p50_p2 = scmp.eq.s32.totalorder %s667_s14, 0  ;;  %p55_p3 = scmp.ne.s32.totalorder %s651_s10, %s647_s9 }
   0xc   : > { %s878_s17 = smov (%p35_p0, %s33_s17), 0  ;;  %p56_p5 = scmp.eq.s32.totalorder %s433_s15, 0 }
   0xd   : > { %p729_p4 = por %p50_p2, %p49_p1  ;;  %s37_s20 = ssub.s32 %s663_s13, %s878_s17 }
   0xe   : > { %p107_p6 = scmp.eq.s32.totalorder %s433_s15, 1  ;;  %p40_p7 = scmp.eq.s32.totalorder %s37_s20, 0 }
   0xf   : > { %p735_p8 = por %p56_p5, %p55_p3  ;;  %p113_p10 = scmp.eq.s32.totalorder %s434_s16, 1 }
  0x10   : > { %p739_p9 = por %p107_p6, %p49_p1  ;;  %p468_p13 = scmp.lt.s32.totalorder %s667_s14, 2 }
  0x11   : > { %s744_s23 = scalar_select %p40_p7, %s655_s11, %s42_s18  }
  0x12   : > { %p746_p11 = por %p113_p10, %p55_p3  ;;  %s753_s25 = sand.u32 1, %s655_s11  }
  0x13   : > { %s437_s26 = sshll.u32 %s753_s25, 3  ;;  %s449_s27 = sshll.u32 %s663_s13, 7 }
  0x14   : > { %s145_s30 = scalar_lea.hbm %s862_s0, %s449_s27  ;;  %s137_s3 = scalar_lea.vmem [#allocation3], %s437_s26 }
  0x15   : > { %s147_s4 = sshll.u32 %s137_s3, 4  ;;  %p762_p0 = pnand %p468_p13, %p729_p4  ;;  %s148_s4 = int_to_ptr.vmem [resolvable:$true] %s147_s4 }
  0x16   : > { %p443_p1 = scmp.ge.s32.totalorder %s667_s14, 1  ;;  %p173_p2 = scmp.lt.s32.totalorder %s667_s14, 3 }
  0x17   : > { %s134_s6 = scalar_lea.sflag [#allocation4], %s753_s25  ;;  %p529_p3 = pneg %p762_p0 }
  0x18   : > { %s540_s7 = scalar_lea.vmem %s148_s4, 128  ;;  %s669_s8 = smov [#allocation3]  }
  0x19   : > { %p541_p5 = scmp.ne.s32.totalorder %s148_s4, %s540_s7  ;;  %s545_s15 = sshll.u32 %s669_s8, 4  ;;  %s546_s15 = int_to_ptr.vmem [resolvable:$false] %s545_s15 }
  0x1a   : > { %s547_s16 = scalar_lea.vmem %s546_s15, 256  ;;  %p548_p4 = scmp.lt.s32.totalorder %s148_s4, %s546_s15 }
  0x1b   : > { %p543_p6 = pnand %p541_p5, %p529_p3  ;;  %p549_p10 = scmp.lt.s32.totalorder %s547_s16, %s540_s7 }
  0x1d   : > { %p544_p7 = pneg %p543_p6  ;;  %p550_p13 = por %p549_p10, %p548_p4 }
  0x1f   : > { %p551_p12 = pnand %p550_p13, %p544_p7 }
  0x21   : > { %554 = shalt.err (!%p551_p12)
}
  0x22   : > { %460 = dma.hbm_to_vmem [thread:$0]  (!%p762_p0), %s145_s30, 128, %s148_s4, %s134_s6  }
  0x23   : > { %p780_p5 = pnand %p443_p1, %p173_p2  ;;  %s166_s28 = scalar_lea.hbm %s863_s1, %s449_s27 }
  0x24   : > { %s158_s29 = scalar_lea.vmem [#allocation6], %s437_s26  ;;  %s155_s7 = scalar_lea.sflag [#allocation7], %s753_s25 }
  0x25   : > { %s168_s3 = sshll.u32 %s158_s29, 4  ;;  %s670_s30 = smov [#allocation6]   ;;  %s169_s3 = int_to_ptr.vmem [resolvable:$true] %s168_s3 }
  0x26   : > { %s568_s8 = scalar_lea.vmem %s169_s3, 128  ;;  %s573_s4 = sshll.u32 %s670_s30, 4  ;;  %s574_s4 = int_to_ptr.vmem [resolvable:$false] %s573_s4 }
  0x27   : > { %p569_p12 = scmp.ne.s32.totalorder %s169_s3, %s568_s8  ;;  %s575_s6 = scalar_lea.vmem %s574_s4, 256 }
  0x28   : > { %p576_p1 = scmp.lt.s32.totalorder %s169_s3, %s574_s4  ;;  %p577_p2 = scmp.lt.s32.totalorder %s575_s6, %s568_s8 }
  0x29   : > { %p571_p6 = pnand %p569_p12, %p529_p3 }
  0x2a   : > { %p578_p4 = por %p577_p2, %p576_p1 }
  0x2b   : > { %p572_p7 = pneg %p571_p6 }
  0x2d   : > { %p579_p10 = pnand %p578_p4, %p572_p7 }
  0x2f   : > { %582 = shalt.err (!%p579_p10)
}
  0x30   : > { %463 = dma.hbm_to_vmem [thread:$0]  (!%p762_p0), %s166_s28, 128, %s169_s3, %s155_s7  }
  0x31   : > { %177 = sbr.rel (%p780_p5) target bundleno = 125 (0x7d), region = 28  ;;  %s796_s25 = sand.u32 (!%p780_p5), 1, %s651_s10  }
  0x32   : > { %s444_s26 = sshll.u32 (!%p780_p5), %s796_s25, 3  ;;  %s180_s27 = scalar_lea.sflag (!%p780_p5), [#allocation4], %s796_s25 }
  0x33   : > { %s183_s15 = scalar_lea.vmem (!%p780_p5), [#allocation3], %s444_s26 }
  0x36   : > { %634 = dma.done.wait (%p735_p8), %s180_s27, 128  }
  0x37   : > { %636 = vsyncadd (%p735_p8), %s180_s27, 4294967168  ;;  %s189_s5 = scalar_lea.sflag [#allocation7], %s796_s25  ;;  %s192_s16 = scalar_lea.vmem [#allocation6], %s444_s26 }
  0x38   : > { %638 = dma.done.wait (%p735_p8), %s189_s5, 128  }
  0x39   : > { %640 = vsyncadd (%p735_p8), %s189_s5, 4294967168  ;;  %v671_v0 = vmov 0.0   ;;  %v224_v1 = vld [vmem:[%s183_s15] sm:$0xff]  ;;  %v225_v2 = vld [vmem:[%s192_s16] sm:$0xff]  ;;  %vm230_vm0 = vcmask 1043456   ;;  %s216_s21 = scalar_lea.vmem [#allocation8], %s796_s25 }
  0x3a   : > { %223 = vst [vmem:[#allocation2] sm:$0x1] %v671_v0  ;;  %v226_v3 = vmul.f32 %v224_v1, %v224_v1  ;;  %v245_v4 = vmul.f32 %v225_v2, %v225_v2  ;;  %v263_v5 = vmul.f32 %v225_v2, %v224_v1  ;;  %s330_s18 = sshll.u32 %s216_s21, 4  ;;  %s446_s19 = sshll.u32 %s659_s12, 4  ;;  %s817_s18 = int_to_ptr.vmem [resolvable:$true] %s330_s18 }
  0x3b   : > { %s328_s29 = scalar_lea.hbm %s864_s2, %s446_s19  ;;  %s318_s3 = scalar_lea.sflag [#allocation5], %s796_s25 }
  0x3c   : > { %v228_v6 = vcombine.high %v226_v3, %v226_v3  ;;  %v231_v7 = vsel %vm230_vm0, %v226_v3, 0.0  ;;  %v247_v8 = vcombine.high %v245_v4, %v245_v4  ;;  %v249_v9 = vsel %vm230_vm0, %v245_v4, 0.0  ;;  %s583_s7 = scalar_lea.vmem %s817_s18, 16  ;;  %s672_s8 = smov [#allocation8]  }
  0x3d   : > { %v232_v10 = vrot.slane %v231_v7, 4  ;;  %v250_v11 = vrot.slane %v249_v9, 4  ;;  %v265_v12 = vcombine.high %v263_v5, %v263_v5  ;;  %v267_v13 = vsel %vm230_vm0, %v263_v5, 0.0  ;;  %p584_p8 = scmp.ne.s32.totalorder %s817_s18, %s583_s7  ;;  %s587_s30 = sshll.u32 %s672_s8, 4  ;;  %s588_s30 = int_to_ptr.vmem [resolvable:$false] %s587_s30 }
  0x3e   : > { %v238_v14 = vsel %vm230_vm0, %v228_v6, 0.0  ;;  %v256_v15 = vsel %vm230_vm0, %v247_v8, 0.0  ;;  %v268_v20 = vrot.slane %v267_v13, 4  ;;  %s589_s12 = scalar_lea.vmem %s588_s30, 32  ;;  %p590_p13 = scmp.lt.s32.totalorder %s817_s18, %s588_s30 }
  0x3f   : > { %v233_v16 = vadd.f32 %v232_v10, %v231_v7  ;;  %v239_v17 = vrot.slane %v238_v14, 4  ;;  %v251_v18 = vadd.f32 %v250_v11, %v249_v9  ;;  %v257_v19 = vrot.slane %v256_v15, 4  ;;  %p585_p0 = pnand %p584_p8, %p739_p9  ;;  %p591_p5 = scmp.lt.s32.totalorder %s589_s12, %s583_s7 }
  0x40   : > { %v274_v21 = vsel %vm230_vm0, %v265_v12, 0.0  ;;  %v269_v31 = vadd.f32 %v268_v20, %v267_v13 }
  0x41   : > { %v234_v22 = vrot.slane %v233_v16, 2  ;;  %v240_v23 = vadd.f32 %v239_v17, %v238_v14  ;;  %v252_v24 = vrot.slane %v251_v18, 2  ;;  %v258_v25 = vadd.f32 %v257_v19, %v256_v15  ;;  %v308_v13 = vld [vmem:[#allocation2] sm:$0x1]  ;;  %p586_p3 = pneg %p585_p0  ;;  %p592_p12 = por %p591_p5, %p590_p13 }
  0x42   : > { %v275_v26 = vrot.slane %v274_v21, 4  ;;  %v270_v41 = vrot.slane %v269_v31, 2 }
  0x43   : > { %v235_v27 = vadd.f32 %v234_v22, %v233_v16  ;;  %v241_v28 = vrot.slane %v240_v23, 2  ;;  %v253_v29 = vadd.f32 %v252_v24, %v251_v18  ;;  %v259_v30 = vrot.slane %v258_v25, 2  ;;  %p593_p6 = pnand %p592_p12, %p586_p3 }
  0x44   : > { %v276_v36 = vadd.f32 %v275_v26, %v274_v21  ;;  %v271_v49 = vadd.f32 %v270_v41, %v269_v31 }
  0x45   : > { %v236_v32 = vrot.slane %v235_v27, 1  ;;  %v242_v33 = vadd.f32 %v241_v28, %v240_v23  ;;  %v254_v34 = vrot.slane %v253_v29, 1  ;;  %v260_v35 = vadd.f32 %v259_v30, %v258_v25 }
  0x46   : > { %v277_v46 = vrot.slane %v276_v36, 2  ;;  %v272_v51 = vrot.slane %v271_v49, 1 }
  0x47   : > { %v237_v37 = vadd.f32 %v236_v32, %v235_v27  ;;  %v243_v38 = vrot.slane %v242_v33, 1  ;;  %v255_v39 = vadd.f32 %v254_v34, %v253_v29  ;;  %v261_v40 = vrot.slane %v260_v35, 1 }
  0x48   : > { %v278_v50 = vadd.f32 %v277_v46, %v276_v36  ;;  %v273_v53 = vadd.f32 %v272_v51, %v271_v49 }
  0x49   : > { %v244_v42 = vadd.f32 %v243_v38, %v242_v33  ;;  %v262_v43 = vadd.f32 %v261_v40, %v260_v35  ;;  %v281_v44 = vmax.f32 %v237_v37, 1e-24  ;;  %v285_v45 = vmax.f32 %v255_v39, 1e-24 }
  0x4a   : > { %v279_v52 = vrot.slane %v278_v50, 1  ;;  %v299_v56 = vmul.f32 2.0, %v273_v53 }
  0x4b   : > { %v282_v47 = vmax.f32 %v244_v42, 1e-24  ;;  %519 = vrsqrt.f32 %v281_v44  ;;  %v286_v48 = vmax.f32 %v262_v43, 1e-24 }
  0x4c   : > { %521 = vrsqrt.f32 %v285_v45  ;;  %v280_v54 = vadd.f32 %v279_v52, %v278_v50 }
  0x4d   : > { %523 = vrsqrt.f32 %v282_v47 }
  0x4e   : > { %525 = vrsqrt.f32 %v286_v48  ;;  %v300_v61 = vmul.f32 2.0, %v280_v54 }
  0x58   : > { %v520_v55 = vpop.eup %519 }
  0x59   : > { %v522_v57 = vpop.eup %521  ;;  %v289_v58 = vmul.f32 %v520_v55, %v520_v55 }
  0x5a   : > { %v524_v59 = vpop.eup %523  ;;  %v293_v60 = vmul.f32 %v522_v57, %v522_v57  ;;  %v301_v62 = vmul.f32 %v522_v57, %v520_v55 }
  0x5b   : > { %v526_v63 = vpop.eup %525  ;;  %v290_v0 = vmul.f32 %v524_v59, %v524_v59  ;;  %v291_v1 = vmul.f32 %v289_v58, %v237_v37 }
  0x5c   : > { %v294_v2 = vmul.f32 %v526_v63, %v526_v63  ;;  %v295_v3 = vmul.f32 %v293_v60, %v255_v39  ;;  %v302_v4 = vmul.f32 %v526_v63, %v524_v59  ;;  %v303_v5 = vmul.f32 %v301_v62, %v299_v56 }
  0x5d   : > { %v292_v6 = vmul.f32 %v290_v0, %v244_v42 }
  0x5e   : > { %v296_v7 = vmul.f32 %v294_v2, %v262_v43  ;;  %v297_v8 = vadd.f32 %v295_v3, %v291_v1  ;;  %v304_v9 = vmul.f32 %v302_v4, %v300_v61 }
  0x60   : > { %v298_v10 = vadd.f32 %v296_v7, %v292_v6  ;;  %v305_v11 = vsub.f32 %v297_v8, %v303_v5 }
  0x62   : > { %v306_v12 = vsub.f32 %v298_v10, %v304_v9 }
  0x64   : > { %v307_v14 = vadd.f32 %v306_v12, %v305_v11 }
  0x66   : > { %v310_v15 = vadd.f32 %v308_v13, %v307_v14 }
  0x68   : > { %311 = vst [vmem:[#allocation2] sm:$0x1] %v310_v15 }
  0x6f   : > { %v315_v16 = vld [vmem:[#allocation2] sm:$0x1] }
  0x70   : > { %316 = vst [vmem:[%s216_s21] sm:$0x1] %v315_v16 }
  0x71   : > { %596 = shalt.err (!%p593_p6)
}
  0x72   : > { %s597_s4 = scalar_lea.hbm %s328_s29, 16  ;;  %s601_s26 = scalar_lea.hbm %s864_s2, 32 }
  0x73   : > { %p598_p7 = scmp.ne.s32.totalorder %s328_s29, %s597_s4  ;;  %p602_p4 = scmp.lt.s32.totalorder %s328_s29, %s864_s2 }
  0x74   : > { %p603_p10 = scmp.lt.s32.totalorder %s601_s26, %s597_s4 }
  0x75   : > { %p599_p1 = pnand %p598_p7, %p739_p9 }
  0x76   : > { %p604_p8 = por %p603_p10, %p602_p4 }
  0x77   : > { %p600_p2 = pneg %p599_p1 }
  0x79   : > { %p605_p0 = pnand %p604_p8, %p600_p2 }
  0x7b   : > { %608 = shalt.err (!%p605_p0)
}
  0x7c   : > { %455 = dma.vmem_to_hbm [thread:$0]  (%p739_p9), %s817_s18, 16, %s328_s29, %s318_s3  }
  0x7d PF: > { %s342_s5 = sand.u32 1, %s647_s9   ;;  %p871_p3 = scmp.ge.s32.totalorder %s667_s14, 2 }
  0x7e   : > { %s343_s16 = scalar_lea.sflag [#allocation5], %s342_s5 }
  0x7f   : > { %p465_p13 = pnand %p871_p3, %p746_p11 }
  0x81   : > { %p466_p5 = pneg %p465_p13 }
  0x83   : > { %642 = dma.done.wait (%p466_p5), %s343_s16, 16  }
  0x84   : > { %644 = vsyncadd (%p466_p5), %s343_s16, 4294967280  ;;  %s21_s14 = sadd.s32 1, %s667_s14   ;;  %s872_s9 = smov %s651_s10 }
  0x85   : > { %p18_p12 = scmp.ge.s32.totalorder %s21_s14, 4   ;;  %s873_s10 = smov %s655_s11 }
  0x86   : > { %s874_s11 = smov %s744_s23  ;;  %s875_s12 = smov %s663_s13 }
  0x87   : > { %s876_s13 = smov %s878_s17  ;;  %20 = sbr.rel (!%p18_p12) target bundleno = 8 (0x8), region = 94 }
  0x8c   :  { %347 = vsyncpa [#allocation4], 1 }
  0x8d   :  { %349 = vsyncpa [#allocation4 + $0x1], 1 }
  0x8e   :  { %350 = vsyncpa [#allocation7], 1 }
  0x8f   :  { %352 = vsyncpa [#allocation7 + $0x1], 1 }
  0x90   :  { %353 = vsyncpa [#allocation5], 1 }
  0x91   :  { %355 = vsyncpa [#allocation5 + $0x1], 1 }

</bundles_post_ra>
